<compile_context>
chip_gen: v5e
topology: v5e:2x2
jax: 0.10.0
libtpu: 0.0.40
codegen_flags: <defaults>
</compile_context>

<pallas_src>
import functools
import math

import jax
import jax.numpy as jnp
from jax import lax
from jax.experimental import pallas as pl
from jax.experimental.pallas import tpu as pltpu


def _round_up(a, b):
    return (a + b - 1) // b * b


def _crelu_kernel(x_ref, w_ref, b_ref, o_ref, p_ref, *,
                  kh, kw, cin, stride, th, wp, coutp, single_tile):
    # x_ref: (Cin, XL)        flattened zero-padded image, lane-dense (bf16)
    # w_ref: (Coutp, K)       BN-scale-folded conv weights, K = KH*KW*Cin (bf16)
    # b_ref: (Coutp, 1)       folded BN bias (f32)
    # o_ref: (2*Coutp, TM)    channel-major output tile, TM = TH*Wp lanes
    # p_ref: (K, TM)          im2col scratch (bf16), rebuilt every grid step
    tm = th * wp
    if single_tile:
        i0 = 0                               # fully static lane offsets on this path
    else:
        i0 = pl.program_id(1) * th           # TODO(synk): dynamic lane offsets on the
                                             # multi-row-tile path; validate on HW.

    # Implicit im2col: each tap is one contiguous (Cin, TM) lane slice of the
    # flattened image (Wp columns per output row are computed; the trailing
    # KW-1 of each row are overcompute and cropped in the wrapper).  The copy
    # into the scratch is a plain sublane-offset store: no reshape, no
    # transpose, no hidden relayout.
    for ki in range(kh):
        for kj in range(kw):
            tap = ki * kw + kj
            start = (i0 * stride + ki) * wp + kj
            if stride == 1:
                slab = x_ref[:, pl.ds(start, tm)]
            else:
                # TODO(synk): strided lane slices (stride > 1) are an uncommon
                # lowering path; validate on hardware before relying on it.
                slab = x_ref[:, pl.ds(start, tm, stride)]
            p_ref[pl.ds(tap * cin, cin), :] = slab

    # One MXU contraction over K = KH*KW*Cin (bf16 operands, f32 accumulate).
    y = jnp.dot(w_ref[...], p_ref[...], preferred_element_type=jnp.float32)
    y = y + b_ref[...]                                           # BN bias, f32

    o_ref[:coutp, :] = jnp.maximum(y, 0.0).astype(o_ref.dtype)   # relu(y)
    o_ref[coutp:, :] = jnp.maximum(-y, 0.0).astype(o_ref.dtype)  # relu(-y)


@functools.partial(jax.jit, static_argnames=("stride", "padding", "out_dtype"))
def crelu_forward(x_nchw, conv_w, gamma, beta, run_mean, run_var,
                  stride=1, padding=1, eps=1e-5, out_dtype=None):
    n, cin, h, w = x_nchw.shape
    cout, _, kh, kw = conv_w.shape
    ho = (h + 2 * padding - kh) // stride + 1
    wo = (w + 2 * padding - kw) // stride + 1
    hp, wp = h + 2 * padding, w + 2 * padding
    out_dtype = jnp.dtype(x_nchw.dtype if out_dtype is None else out_dtype)

    # --- BN folding (eval mode) + weight layout --------------------------------
    inv_std = lax.rsqrt(run_var + eps)
    scale = gamma * inv_std                                      # (Cout,)
    bias = beta - run_mean * scale                               # (Cout,)
    w_folded = conv_w * scale[:, None, None, None]               # (Cout,Cin,KH,KW)

    # Pad Cout so the relu(y)/relu(-y) split lands on sublane-tile boundaries.
    sub = 16 if out_dtype == jnp.dtype(jnp.bfloat16) else 8
    coutp = _round_up(cout, sub)
    k = kh * kw * cin
    # (Cout,Cin,KH,KW) -> (Coutp, K) with K index = (ki*KW + kj)*Cin + c.
    w_mat = jnp.transpose(w_folded, (0, 2, 3, 1)).reshape(cout, k)
    if coutp != cout:
        w_mat = jnp.pad(w_mat, ((0, coutp - cout), (0, 0)))
        bias = jnp.pad(bias, (0, coutp - cout))
    w_mat = w_mat.astype(jnp.bfloat16)
    bias = bias.reshape(coutp, 1).astype(jnp.float32)

    # --- row-tile selection -----------------------------------------------------
    itemsize = out_dtype.itemsize
    lane_target = 8192            # ~8K lanes amortizes the ~0.35us/step overhead
    tile_budget = 8 << 20         # per-buffer output-tile budget (bytes)

    def tile_bytes(th_):
        return 2 * coutp * th_ * wp * itemsize

    cands = [d for d in range(1, ho + 1)
             if ho % d == 0 and (d * wp) % 128 == 0 and tile_bytes(d) <= tile_budget]
    if cands:
        good = [d for d in cands if d * wp <= lane_target]
        th, ho_pad = (max(good) if good else min(cands)), ho
    elif tile_bytes(ho) <= tile_budget:
        # Guarded full-extent fallback: only taken when the whole per-image tile
        # is small, so it can never silently blow the scoped VMEM limit.
        th, ho_pad = ho, ho
    else:
        # Pad Ho so a 128-lane-aligned tile always exists; extra rows are
        # cropped in the wrapper.
        th = 128 // math.gcd(wp, 128)
        while th * 2 <= ho and th * 2 * wp <= lane_target and tile_bytes(th * 2) <= tile_budget:
            th *= 2
        ho_pad = _round_up(ho, th)

    grid_rows = ho_pad // th
    grid = (n, grid_rows)
    tm = th * wp

    # --- input: padded NCHW flattened to a lane-dense (Cin, Hp*Wp) slab ---------
    x_pad = jnp.pad(x_nchw,
                    ((0, 0), (0, 0), (padding, padding), (padding, padding)))
    # Tail-pad the flat spatial axis so every tap's lane window (including the
    # overcompute columns of the last tile) stays in bounds.
    last_i0 = (grid_rows - 1) * th
    max_start = (last_i0 * stride + (kh - 1)) * wp + (kw - 1)
    xlen = _round_up(max(max_start + (tm - 1) * stride + 1, hp * wp), 128)
    x_flat = jnp.pad(x_pad.reshape(n, cin, hp * wp),
                     ((0, 0), (0, 0), (0, xlen - hp * wp))).astype(jnp.bfloat16)

    kernel = functools.partial(
        _crelu_kernel, kh=kh, kw=kw, cin=cin, stride=stride, th=th, wp=wp,
        coutp=coutp, single_tile=(grid_rows == 1))

    out_flat = pl.pallas_call(
        kernel,
        out_shape=jax.ShapeDtypeStruct((n, 2 * coutp, ho_pad * wp), out_dtype),
        grid_spec=pltpu.PrefetchScalarGridSpec(
            num_scalar_prefetch=0,
            grid=grid,
            in_specs=[
                # Whole flattened image of batch element b, resident across row
                # tiles.  In this layout it is ~Cin*Hp*Wp*2B (~32x smaller than
                # the old NHWC block), so double-buffering it is no longer a
                # VMEM concern even on v7x.
                # TODO(synk): for very large H*W on v7x (64 MiB VMEM), window
                # the image per row tile with a manual halo'd DMA instead.
                pl.BlockSpec((None, cin, xlen), lambda b, t: (b, 0, 0)),
                pl.BlockSpec((coutp, k), lambda b, t: (0, 0)),
                pl.BlockSpec((coutp, 1), lambda b, t: (0, 0)),
            ],
            out_specs=pl.BlockSpec((None, 2 * coutp, tm), lambda b, t: (b, 0, t)),
            scratch_shapes=[pltpu.VMEM((k, tm), jnp.bfloat16)],
        ),
        compiler_params=pltpu.CompilerParams(
            # Row tiles write disjoint output blocks and only read x: both grid
            # axes are parallel so v7x's two TensorCores can split the work.
            dimension_semantics=("parallel", "parallel"),
            # Above the 16 MiB (v5e) / 32 MiB (v6e, v7x) scoped defaults, below
            # v7x's 64 MiB physical VMEM.
            vmem_limit_bytes=48 * 1024 * 1024),
    )(x_flat, w_mat, bias)

    # Crop overcompute columns (Wp -> Wo), padded channels and padded rows.
    out = out_flat.reshape(n, 2, coutp, ho_pad, wp)[:, :, :cout, :ho, :wo]
    return out.reshape(n, 2 * cout, ho, wo)


def _reference(x_nchw, conv_w, gamma, beta, run_mean, run_var,
               stride=1, padding=1, eps=1e-5):
    # Matched-precision reference: same BN fold + bf16 operand quantization as
    # the kernel path, f32 accumulation via XLA's conv.
    inv_std = lax.rsqrt(run_var + eps)
    scale = gamma * inv_std
    bias = beta - run_mean * scale
    w_folded = (conv_w * scale[:, None, None, None]).astype(jnp.bfloat16)
    y = lax.conv_general_dilated(
        x_nchw.astype(jnp.bfloat16), w_folded,
        window_strides=(stride, stride),
        padding=[(padding, padding), (padding, padding)],
        dimension_numbers=("NCHW", "OIHW", "NCHW"),
        preferred_element_type=jnp.float32)
    y = y + bias[None, :, None, None]
    return jnp.maximum(jnp.concatenate([y, -y], axis=1), 0.0)


if __name__ == "__main__":
    key = jax.random.PRNGKey(0)
    k_x, k_w, k_g, k_b, k_m, k_v = jax.random.split(key, 6)

    N, Cin, H, W = 2, 4, 16, 16
    Cout, KH, KW = 8, 3, 3
    stride, padding = 1, 1

    x = jax.random.normal(k_x, (N, Cin, H, W), dtype=jnp.float32)
    conv_w = 0.1 * jax.random.normal(k_w, (Cout, Cin, KH, KW), dtype=jnp.float32)
    gamma = 1.0 + 0.1 * jax.random.normal(k_g, (Cout,), dtype=jnp.float32)
    beta = 0.1 * jax.random.normal(k_b, (Cout,), dtype=jnp.float32)
    run_mean = 0.1 * jax.random.normal(k_m, (Cout,), dtype=jnp.float32)
    run_var = jnp.abs(1.0 + 0.1 * jax.random.normal(k_v, (Cout,), dtype=jnp.float32))

    out = crelu_forward(x, conv_w, gamma, beta, run_mean, run_var,
                        stride=stride, padding=padding)
    out = jax.block_until_ready(out)

    ref = _reference(x, conv_w, gamma, beta, run_mean, run_var,
                     stride=stride, padding=padding)
    assert out.shape == (N, 2 * Cout, H, W), out.shape
    err = float(jnp.max(jnp.abs(out.astype(jnp.float32) - ref.astype(jnp.float32))))
    assert jnp.allclose(out.astype(jnp.float32), ref.astype(jnp.float32),
                        atol=2e-2, rtol=2e-2), err

    print("KERNEL_OK")
</pallas_src>

<mosaic_0001>
module attributes {stable_mosaic.version = 11 : i64} {
  func.func @_crelu_kernel(%arg0: i32, %arg1: i32, %arg2: memref<1x4x384xbf16, #tpu.memory_space<vmem>>, %arg3: memref<8x36xbf16, #tpu.memory_space<vmem>>, %arg4: memref<8x1xf32, #tpu.memory_space<vmem>>, %arg5: memref<1x16x288xf32, #tpu.memory_space<vmem>>, %arg6: memref<36x288xbf16, #tpu.memory_space<vmem>>) attributes {dimension_semantics = [#tpu.dimension_semantics<parallel>, #tpu.dimension_semantics<parallel>], iteration_bounds = array<i64: 2, 1>, scalar_prefetch = 0 : i64, scratch_operands = 1 : i64, tpu.core_type = #tpu.core_type<tc>, window_params = [{transform_indices = @transform_0, window_bounds = array<i64: 1, 4, 384>}, {pipeline_mode = #tpu.pipeline_mode<synchronous>, transform_indices = @transform_1, window_bounds = array<i64: 8, 36>}, {pipeline_mode = #tpu.pipeline_mode<synchronous>, transform_indices = @transform_2, window_bounds = array<i64: 8, 1>}, {transform_indices = @transform_3, window_bounds = array<i64: 1, 16, 288>}]} {
    %c0 = arith.constant 0 : index
    %c0_0 = arith.constant 0 : index
    %c0_1 = arith.constant 0 : index
    %0 = vector.load %arg2[%c0, %c0_0, %c0_1] : memref<1x4x384xbf16, #tpu.memory_space<vmem>>, vector<1x4x288xbf16>
    %1 = vector.shape_cast %0 : vector<1x4x288xbf16> to vector<4x288xbf16>
    %c0_2 = arith.constant 0 : index
    %c0_3 = arith.constant 0 : index
    %2 = vector.load %arg6[%c0_2, %c0_3] : memref<36x288xbf16, #tpu.memory_space<vmem>>, vector<4x288xbf16>
    tpu.vector_store %arg6[%c0_2, %c0_3], %1 {strides = array<i32>} : memref<36x288xbf16, #tpu.memory_space<vmem>>, vector<4x288xbf16>,
    %c0_4 = arith.constant 0 : index
    %c0_5 = arith.constant 0 : index
    %c1 = arith.constant 1 : index
    %3 = vector.load %arg2[%c0_4, %c0_5, %c1] : memref<1x4x384xbf16, #tpu.memory_space<vmem>>, vector<1x4x288xbf16>
    %4 = vector.shape_cast %3 : vector<1x4x288xbf16> to vector<4x288xbf16>
    %c4 = arith.constant 4 : index
    %c0_6 = arith.constant 0 : index
    %5 = vector.load %arg6[%c4, %c0_6] : memref<36x288xbf16, #tpu.memory_space<vmem>>, vector<4x288xbf16>
    tpu.vector_store %arg6[%c4, %c0_6], %4 {strides = array<i32>} : memref<36x288xbf16, #tpu.memory_space<vmem>>, vector<4x288xbf16>,
    %c0_7 = arith.constant 0 : index
    %c0_8 = arith.constant 0 : index
    %c2 = arith.constant 2 : index
    %6 = vector.load %arg2[%c0_7, %c0_8, %c2] : memref<1x4x384xbf16, #tpu.memory_space<vmem>>, vector<1x4x288xbf16>
    %7 = vector.shape_cast %6 : vector<1x4x288xbf16> to vector<4x288xbf16>
    %c8 = arith.constant 8 : index
    %c0_9 = arith.constant 0 : index
    %8 = vector.load %arg6[%c8, %c0_9] : memref<36x288xbf16, #tpu.memory_space<vmem>>, vector<4x288xbf16>
    tpu.vector_store %arg6[%c8, %c0_9], %7 {strides = array<i32>} : memref<36x288xbf16, #tpu.memory_space<vmem>>, vector<4x288xbf16>,
    %c0_10 = arith.constant 0 : index
    %c0_11 = arith.constant 0 : index
    %c18 = arith.constant 18 : index
    %9 = vector.load %arg2[%c0_10, %c0_11, %c18] : memref<1x4x384xbf16, #tpu.memory_space<vmem>>, vector<1x4x288xbf16>
    %10 = vector.shape_cast %9 : vector<1x4x288xbf16> to vector<4x288xbf16>
    %c12 = arith.constant 12 : index
    %c0_12 = arith.constant 0 : index
    %11 = vector.load %arg6[%c12, %c0_12] : memref<36x288xbf16, #tpu.memory_space<vmem>>, vector<4x288xbf16>
    tpu.vector_store %arg6[%c12, %c0_12], %10 {strides = array<i32>} : memref<36x288xbf16, #tpu.memory_space<vmem>>, vector<4x288xbf16>,
    %c0_13 = arith.constant 0 : index
    %c0_14 = arith.constant 0 : index
    %c19 = arith.constant 19 : index
    %12 = vector.load %arg2[%c0_13, %c0_14, %c19] : memref<1x4x384xbf16, #tpu.memory_space<vmem>>, vector<1x4x288xbf16>
    %13 = vector.shape_cast %12 : vector<1x4x288xbf16> to vector<4x288xbf16>
    %c16 = arith.constant 16 : index
    %c0_15 = arith.constant 0 : index
    %14 = vector.load %arg6[%c16, %c0_15] : memref<36x288xbf16, #tpu.memory_space<vmem>>, vector<4x288xbf16>
    tpu.vector_store %arg6[%c16, %c0_15], %13 {strides = array<i32>} : memref<36x288xbf16, #tpu.memory_space<vmem>>, vector<4x288xbf16>,
    %c0_16 = arith.constant 0 : index
    %c0_17 = arith.constant 0 : index
    %c20 = arith.constant 20 : index
    %15 = vector.load %arg2[%c0_16, %c0_17, %c20] : memref<1x4x384xbf16, #tpu.memory_space<vmem>>, vector<1x4x288xbf16>
    %16 = vector.shape_cast %15 : vector<1x4x288xbf16> to vector<4x288xbf16>
    %c20_18 = arith.constant 20 : index
    %c0_19 = arith.constant 0 : index
    %17 = vector.load %arg6[%c20_18, %c0_19] : memref<36x288xbf16, #tpu.memory_space<vmem>>, vector<4x288xbf16>
    tpu.vector_store %arg6[%c20_18, %c0_19], %16 {strides = array<i32>} : memref<36x288xbf16, #tpu.memory_space<vmem>>, vector<4x288xbf16>,
    %c0_20 = arith.constant 0 : index
    %c0_21 = arith.constant 0 : index
    %c36 = arith.constant 36 : index
    %18 = vector.load %arg2[%c0_20, %c0_21, %c36] : memref<1x4x384xbf16, #tpu.memory_space<vmem>>, vector<1x4x288xbf16>
    %19 = vector.shape_cast %18 : vector<1x4x288xbf16> to vector<4x288xbf16>
    %c24 = arith.constant 24 : index
    %c0_22 = arith.constant 0 : index
    %20 = vector.load %arg6[%c24, %c0_22] : memref<36x288xbf16, #tpu.memory_space<vmem>>, vector<4x288xbf16>
    tpu.vector_store %arg6[%c24, %c0_22], %19 {strides = array<i32>} : memref<36x288xbf16, #tpu.memory_space<vmem>>, vector<4x288xbf16>,
    %c0_23 = arith.constant 0 : index
    %c0_24 = arith.constant 0 : index
    %c37 = arith.constant 37 : index
    %21 = vector.load %arg2[%c0_23, %c0_24, %c37] : memref<1x4x384xbf16, #tpu.memory_space<vmem>>, vector<1x4x288xbf16>
    %22 = vector.shape_cast %21 : vector<1x4x288xbf16> to vector<4x288xbf16>
    %c28 = arith.constant 28 : index
    %c0_25 = arith.constant 0 : index
    %23 = vector.load %arg6[%c28, %c0_25] : memref<36x288xbf16, #tpu.memory_space<vmem>>, vector<4x288xbf16>
    tpu.vector_store %arg6[%c28, %c0_25], %22 {strides = array<i32>} : memref<36x288xbf16, #tpu.memory_space<vmem>>, vector<4x288xbf16>,
    %c0_26 = arith.constant 0 : index
    %c0_27 = arith.constant 0 : index
    %c38 = arith.constant 38 : index
    %24 = vector.load %arg2[%c0_26, %c0_27, %c38] : memref<1x4x384xbf16, #tpu.memory_space<vmem>>, vector<1x4x288xbf16>
    %25 = vector.shape_cast %24 : vector<1x4x288xbf16> to vector<4x288xbf16>
    %c32 = arith.constant 32 : index
    %c0_28 = arith.constant 0 : index
    %26 = vector.load %arg6[%c32, %c0_28] : memref<36x288xbf16, #tpu.memory_space<vmem>>, vector<4x288xbf16>
    tpu.vector_store %arg6[%c32, %c0_28], %25 {strides = array<i32>} : memref<36x288xbf16, #tpu.memory_space<vmem>>, vector<4x288xbf16>,
    %c0_29 = arith.constant 0 : index
    %c0_30 = arith.constant 0 : index
    %27 = vector.load %arg3[%c0_29, %c0_30] : memref<8x36xbf16, #tpu.memory_space<vmem>>, vector<8x36xbf16>
    %c0_31 = arith.constant 0 : index
    %c0_32 = arith.constant 0 : index
    %28 = vector.load %arg6[%c0_31, %c0_32] : memref<36x288xbf16, #tpu.memory_space<vmem>>, vector<36x288xbf16>
    %cst = arith.constant dense<0.000000e+00> : vector<8x288xf32>
    %29 = tpu.matmul %27, %28, %cst {dimension_numbers = #tpu.dot_dimension_numbers<[1], [0], [0], [1], [0, 0, 1, 1], [], []>} : vector<8x36xbf16>, vector<36x288xbf16>, vector<8x288xf32> -> vector<8x288xf32>
    %c0_33 = arith.constant 0 : index
    %c0_34 = arith.constant 0 : index
    %30 = vector.load %arg4[%c0_33, %c0_34] : memref<8x1xf32, #tpu.memory_space<vmem>>, vector<8x1xf32>
    %31 = vector.broadcast %30 : vector<8x1xf32> to vector<8x288xf32>
    %32 = arith.addf %29, %31 : vector<8x288xf32>
    %cst_35 = arith.constant 0.000000e+00 : f32
    %33 = vector.broadcast %cst_35 : f32 to vector<8x288xf32>
    %34 = arith.maximumf %32, %33 : vector<8x288xf32>
    %c0_36 = arith.constant 0 : index
    %c0_37 = arith.constant 0 : index
    %c0_38 = arith.constant 0 : index
    %35 = vector.load %arg5[%c0_36, %c0_37, %c0_38] : memref<1x16x288xf32, #tpu.memory_space<vmem>>, vector<1x8x288xf32>
    %36 = vector.shape_cast %35 : vector<1x8x288xf32> to vector<8x288xf32>
    %37 = vector.shape_cast %34 : vector<8x288xf32> to vector<1x8x288xf32>
    tpu.vector_store %arg5[%c0_36, %c0_37, %c0_38], %37 {strides = array<i32>} : memref<1x16x288xf32, #tpu.memory_space<vmem>>, vector<1x8x288xf32>,
    %cst_39 = arith.constant 0.000000e+00 : f32
    %38 = vector.broadcast %cst_39 : f32 to vector<8x288xf32>
    %39 = arith.subf %38, %32 : vector<8x288xf32>
    %cst_40 = arith.constant 0.000000e+00 : f32
    %40 = vector.broadcast %cst_40 : f32 to vector<8x288xf32>
    %41 = arith.maximumf %39, %40 : vector<8x288xf32>
    %c0_41 = arith.constant 0 : index
    %c8_42 = arith.constant 8 : index
    %c0_43 = arith.constant 0 : index
    %42 = vector.load %arg5[%c0_41, %c8_42, %c0_43] : memref<1x16x288xf32, #tpu.memory_space<vmem>>, vector<1x8x288xf32>
    %43 = vector.shape_cast %42 : vector<1x8x288xf32> to vector<8x288xf32>
    %44 = vector.shape_cast %41 : vector<8x288xf32> to vector<1x8x288xf32>
    tpu.vector_store %arg5[%c0_41, %c8_42, %c0_43], %44 {strides = array<i32>} : memref<1x16x288xf32, #tpu.memory_space<vmem>>, vector<1x8x288xf32>,
    return
  }
  func.func @transform_0(%arg0: i32, %arg1: i32) -> (i32, i32, i32) {
    %c0_i32 = arith.constant 0 : i32
    %c0_i32_0 = arith.constant 0 : i32
    %c0_i32_1 = arith.constant 0 : i32
    return %arg0, %c0_i32, %c0_i32_0 : i32, i32, i32
  }
  func.func @transform_1(%arg0: i32, %arg1: i32) -> (i32, i32) {
    %c0_i32 = arith.constant 0 : i32
    %c0_i32_0 = arith.constant 0 : i32
    %c0_i32_1 = arith.constant 0 : i32
    return %c0_i32, %c0_i32_0 : i32, i32
  }
  func.func @transform_2(%arg0: i32, %arg1: i32) -> (i32, i32) {
    %c0_i32 = arith.constant 0 : i32
    %c0_i32_0 = arith.constant 0 : i32
    %c0_i32_1 = arith.constant 0 : i32
    return %c0_i32, %c0_i32_0 : i32, i32
  }
  func.func @transform_3(%arg0: i32, %arg1: i32) -> (i32, i32, i32) {
    %c0_i32 = arith.constant 0 : i32
    %c0_i32_0 = arith.constant 0 : i32
    return %arg0, %c0_i32, %arg1 : i32, i32, i32
  }
}

</mosaic_0001>

<bundles_post_ra>
// kernel: crelu_forward.1
= control target key start
LH: loop header
LB: loop body
LE: loop exit
PB: predicated region body
PF: predicated region fallthrough
CT: control target
= control target key end

     0   :  { %s710_s12 = smov 0   ;;  %s712_s13 = smov 0   ;;  %s788_s0 = inlined_call_operand.vmem [shape: bf16[2,4,384], index: 0, kind: input, shape index: {}]   ;;  %s789_s1 = inlined_call_operand.vmem [shape: bf16[8,36], index: 1, kind: input, shape index: {}]   ;;  %s790_s2 = inlined_call_operand.vmem [shape: f32[8,1], index: 2, kind: input, shape index: {}]   ;;  %s791_s3 = inlined_call_operand.vmem [shape: f32[2,16,288], index: 3, kind: output, shape index: {}]  }
   0x1   :  { %s714_s14 = smov 0  }
   0x2 LB: > { %s25_s15 = sadd.s32 1, %s675_s13  ;;  %p582_p0 = scmp.ge.s32.totalorder %s679_s14, 1  ;;  %s679_s14 = sphi %s714_s14, %s13_s14   ;;  %s675_s13 = sphi %s712_s13, %s793_s13   ;;  %s671_s12 = sphi %s710_s12, %s792_s12  }
   0x3   : > { %p27_p1 = scmp.ge.s32.totalorder %s25_s15, 2  ;;  %p151_p2 = scmp.lt.s32.totalorder %s679_s14, 3 }
   0x5   : > { %s795_s15 = smov (%p27_p1, %s25_s15), 0  ;;  %p152_p3 = pnand %p582_p0, %p151_p2 }
   0x6   : > { %p179_p4 = scmp.lt.s32.totalorder (!%p152_p3), %s671_s12, 1  ;;  %s681_s20 = smov (!%p152_p3), 127  }
   0x7   : > { %155 = sbr.rel (%p152_p3) target bundleno = 379 (0x17b), region = 32  ;;  %s682_s21 = smov (!%p152_p3), 126  }
   0x8   : > { %s683_s22 = smov (!%p152_p3), 109   ;;  %s684_s23 = smov (!%p152_p3), 108  }
   0x9   : > { %s685_s24 = smov (!%p152_p3), 92   ;;  %s686_s25 = smov (!%p152_p3), 91  }
   0xa   : > { %s687_s26 = smov (!%p152_p3), 90   ;;  %s688_s27 = smov (!%p152_p3), 110  }
   0xc   : > { %s797_s12 = smov (!%p179_p4, %s671_s12), 1  ;;  %vm203_vm0 = vcmask 254976   ;;  %vm226_vm1 = vcmask 257026   ;;  %vm219_vm2 = vcmask 1043456   ;;  %vm283_vm3 = vcmask 891904  }
   0xd   : > { %s620_s16 = smul.u32 6, %s797_s12  ;;  %vm324_vm4 = vcmask 752640   ;;  %vm304_vm5 = vcmask 883712   ;;  %vm242_vm6 = vcmask 1031168   ;;  %vm221_vm7 = vcmask 1039360  }
   0xe   : > { %vm345_vm8 = vcmask 744448   ;;  %vm365_vm9 = vcmask 736256   ;;  %vm432_vm10 = vcmask 1041408   ;;  %vm263_vm11 = vcmask 900096   ;;  %s621_s5 = smul.u32 48, %s797_s12 }
   0xf   : > { %s734_s19 = scalar_lea.vmem %s788_s0, %s620_s16  ;;  %vm428_vm12 = vcmask 293888   ;;  %vm486_vm13 = vcmask 261120  }
  0x10   : > { %v195_v0 = vld [vmem:[%s734_s19] sm:$0x3f]  ;;  %s192_s8 = scalar_lea.vmem %s791_s3, %s621_s5 }
  0x11   : > { %197 = vst [vmem:[#allocation1] ss:$2 sm:$0xff] %v195_v0  ;;  %v205_v1 = vld [vmem:[%s734_s19] sm:$0x3f] }
  0x12   : > { %v228_v4 = vld [vmem:[%s734_s19] sm:$0x3f] }
  0x13   : > { %v248_v7 = vld [vmem:[%s734_s19] sm:$0x3f] }
  0x14   : > { %v269_v10 = vld [vmem:[%s734_s19] sm:$0x3f] }
  0x15   : > { %v289_v13 = vld [vmem:[%s734_s19] sm:$0x3f] }
  0x16   : > { %v310_v16 = vld [vmem:[%s734_s19] sm:$0x3f] }
  0x17   : > { %v330_v19 = vld [vmem:[%s734_s19] sm:$0x3f] }
  0x18   : > { %v198_v2 = vld.sshfl [vmem:[#allocation1] sm:$0xff pattern:$0x75643120]  ;;  %v199_v3 = vld.sshfl [vmem:[#allocation1 + $0x8] sm:$0xff pattern:$0x75643120] }
  0x19   : > { %208 = vst [vmem:[#allocation1 + $0x1] ss:$2 sm:$0xff] %v205_v1  ;;  %v351_v22 = vld [vmem:[%s734_s19] sm:$0x3f] }
  0x1a   : > { %202 = vst [vmem:[#allocation2] sm:$0x33] %v198_v2 }
  0x1b   : > { %204 = vst.msk [vmem:[#allocation2 + $0x8] sm:$0x3] %vm203_vm0, %v199_v3 }
  0x20   : > { %v211_v5 = vld.sshfl [vmem:[#allocation1 + $0x8] sm:$0xff pattern:$0x75643120]  ;;  %v209_v6 = vld.sshfl [vmem:[#allocation1] sm:$0xff pattern:$0x75643120] }
  0x21   : > { %215 = vrot.lane.b32.xlu1 %v211_v5, %s681_s20  ;;  %230 = vst [vmem:[#allocation1] ss:$2 sm:$0xff] %v228_v4  ;;  %v382_v5 = vld [vmem:[%s790_s2] sm:$0xff] }
  0x28   : > { %v231_v8 = vld.sshfl [vmem:[#allocation1] sm:$0xff pattern:$0x75643120]  ;;  %v233_v9 = vld.sshfl [vmem:[#allocation1 + $0x8] sm:$0xff pattern:$0x75643120] }
  0x29   : > { %251 = vst [vmem:[#allocation1 + $0x1] ss:$2 sm:$0xff] %v248_v7  ;;  %237 = vrot.lane.b32.xlu2 %v233_v9, %s682_s21 }
  0x30   : > { %v252_v11 = vld.sshfl [vmem:[#allocation1] sm:$0xff pattern:$0x75643120]  ;;  %v254_v12 = vld.sshfl [vmem:[#allocation1 + $0x8] sm:$0xff pattern:$0x75643120] }
  0x31   : > { %271 = vst [vmem:[#allocation1] ss:$2 sm:$0xff] %v269_v10 }
  0x38   : > { %v274_v14 = vld.sshfl [vmem:[#allocation1 + $0x8] sm:$0xff pattern:$0x75643120]  ;;  %v272_v15 = vld.sshfl [vmem:[#allocation1] sm:$0xff pattern:$0x75643120] }
  0x39   : > { %278 = vrot.lane.b32.xlu1 %v274_v14, %s683_s22  ;;  %292 = vst [vmem:[#allocation1 + $0x1] ss:$2 sm:$0xff] %v289_v13  ;;  %276 = vrot.lane.b32.xlu0 %v272_v15, %s683_s22 }
  0x40   : > { %v295_v17 = vld.sshfl [vmem:[#allocation1 + $0x8] sm:$0xff pattern:$0x75643120]  ;;  %v293_v18 = vld.sshfl [vmem:[#allocation1] sm:$0xff pattern:$0x75643120] }
  0x41   : > { %299 = vrot.lane.b32.xlu1 %v295_v17, %s684_s23  ;;  %312 = vst [vmem:[#allocation1] ss:$2 sm:$0xff] %v310_v16 }
  0x48   : > { %v315_v20 = vld.sshfl [vmem:[#allocation1 + $0x8] sm:$0xff pattern:$0x75643120]  ;;  %v313_v21 = vld.sshfl [vmem:[#allocation1] sm:$0xff pattern:$0x75643120] }
  0x49   : > { %297 = vrot.lane.b32.xlu1 %v293_v18, %s684_s23  ;;  %319 = vrot.lane.b32.xlu2 %v315_v20, %s685_s24  ;;  %333 = vst [vmem:[#allocation1 + $0x1] ss:$2 sm:$0xff] %v330_v19 }
  0x50   : > { %v334_v23 = vld.sshfl [vmem:[#allocation1] sm:$0xff pattern:$0x75643120]  ;;  %v336_v24 = vld.sshfl [vmem:[#allocation1 + $0x8] sm:$0xff pattern:$0x75643120] }
  0x51   : > { %213 = vrot.lane.b32.xlu1 %v209_v6, %s681_s20  ;;  %338 = vrot.lane.b32.xlu0 %v334_v23, %s686_s25  ;;  %353 = vst [vmem:[#allocation1] ss:$2 sm:$0xff] %v351_v22 }
  0x52   : > { %317 = vrot.lane.b32.xlu2 %v313_v21, %s685_s24 }
  0x58   : > { %v356_v25 = vld.sshfl [vmem:[#allocation1 + $0x8] sm:$0xff pattern:$0x75643120]  ;;  %v354_v26 = vld.sshfl [vmem:[#allocation1] sm:$0xff pattern:$0x75643120] }
  0x59   : > { %360 = vrot.lane.b32.xlu0 %v356_v25, %s687_s26 }
  0x5a   : > { %340 = vrot.lane.b32.xlu2 %v336_v24, %s686_s25 }
  0x61   : > { %358 = vrot.lane.b32.xlu0 %v354_v26, %s687_s26 }
  0x62   : > { %235 = vrot.lane.b32.xlu2 %v231_v8, %s682_s21  ;;  %v689_v8 = vmov 0  }
  0x63   : > { %655 = vset.pattern.permute.xlu1 %v689_v8  ;;  %656 = vset.pattern.permute.xlu0 %v689_v8 }
  0x64   : > { %385 = vperm.xlu1 %655, %v382_v5  }
  0x69   : > { %258 = vrot.lane.b32.xlu0 %v254_v12, %s688_s27 }
  0x71   : > { %256 = vrot.lane.b32.xlu0 %v252_v11, %s688_s27 }
  0x83   : > { %v238_v27 = vpop.permute.xlu2 %237 }
  0x84   : > { %247 = vst.msk [vmem:[#allocation2 + $0x14] sm:$0x3] %vm203_vm0, %v238_v27  ;;  %v240_v44 = vrot.slane %v238_v27, 4 }
  0x93   : > { %v216_v28 = vpop.permute.xlu1 %215 }
  0x94   : > { %227 = vst.msk [vmem:[#allocation2 + $0x8] sm:$0xc] %vm226_vm1, %v216_v28  ;;  %v218_v53 = vrot.slane %v216_v28, 4 }
  0x9b   : > { %v595_v20 = vld [vmem:[#allocation2 + $0x8] sm:$0xf] }
  0xa3   : > { %v320_v29 = vpop.permute.xlu2 %319 }
  0xa4   : > { %329 = vst.msk [vmem:[#allocation2 + $0x2c] sm:$0x3] %vm203_vm0, %v320_v29  ;;  %v322_v31 = vrot.slane %v320_v29, 4 }
  0xab   : > { %v279_v30 = vpop.permute.xlu1 %278  ;;  %v277_v32 = vpop.permute.xlu0 %276 }
  0xac   : > { %v281_v33 = vrot.slane %v279_v30, 4  ;;  %288 = vst.msk [vmem:[#allocation2 + $0x20] sm:$0x3] %vm203_vm0, %v279_v30  ;;  %v318_v34 = vpop.permute.xlu2 %317  ;;  %v280_v35 = vrot.slane %v277_v32, 4 }
  0xad   : > { %v321_v36 = vrot.slane %v318_v34, 4 }
  0xae   : > { %v282_v37 = vsel %vm219_vm2, %v280_v35, %v281_v33 }
  0xaf   : > { %v323_v38 = vsel %vm219_vm2, %v321_v36, %v322_v31  ;;  %v284_v39 = vsel %vm283_vm3, %v277_v32, %v282_v37  ;;  %v371_v36 = vld [vmem:[%s789_s1] sm:$0xf] }
  0xb0   : > { %v325_v40 = vsel %vm324_vm4, %v318_v34, %v323_v38  ;;  %287 = vst [vmem:[#allocation2 + $0x18] sm:$0x33] %v284_v39 }
  0xb1   : > { %328 = vst [vmem:[#allocation2 + $0x24] sm:$0x33] %v325_v40 }
  0xb3   : > { %v300_v41 = vpop.permute.xlu1 %299 }
  0xb4   : > { %309 = vst.msk [vmem:[#allocation2 + $0x20] sm:$0xc] %vm226_vm1, %v300_v41  ;;  %v341_v42 = vpop.permute.xlu2 %340  ;;  %v302_v43 = vrot.slane %v300_v41, 4 }
  0xb5   : > { %350 = vst.msk [vmem:[#allocation2 + $0x2c] sm:$0xc] %vm226_vm1, %v341_v42  ;;  %v343_v54 = vrot.slane %v341_v42, 4 }
  0xbb   : > { %v298_v45 = vpop.permute.xlu1 %297  ;;  %v607_v10 = vld [vmem:[#allocation2 + $0x20] sm:$0xf] }
  0xbc   : > { %v301_v46 = vrot.slane %v298_v45, 4  ;;  %v236_v47 = vpop.permute.xlu2 %235  ;;  %v619_v12 = vld [vmem:[#allocation2 + $0x28] sm:$0xf0] }
  0xbd   : > { %v239_v48 = vrot.slane %v236_v47, 4  ;;  %v608_v14 = vor.u32 %v619_v12, %v607_v10 }
  0xbe   : > { %v303_v49 = vsel %vm219_vm2, %v301_v46, %v302_v43 }
  0xbf   : > { %v305_v50 = vsel %vm304_vm5, %v298_v45, %v303_v49  ;;  %v241_v51 = vsel %vm219_vm2, %v239_v48, %v240_v44 }
  0xc0   : > { %308 = vst [vmem:[#allocation2 + $0x18] sm:$0xcc] %v305_v50  ;;  %v243_v52 = vsel %vm242_vm6, %v236_v47, %v241_v51 }
  0xc1   : > { %246 = vst [vmem:[#allocation2 + $0xc] sm:$0x33] %v243_v52 }
  0xc3   : > { %v214_v55 = vpop.permute.xlu1 %213  ;;  %v339_v56 = vpop.permute.xlu0 %338 }
  0xc4   : > { %v217_v57 = vrot.slane %v214_v55, 4  ;;  %v342_v58 = vrot.slane %v339_v56, 4 }
  0xc6   : > { %v220_v59 = vsel %vm219_vm2, %v217_v57, %v218_v53  ;;  %v344_v60 = vsel %vm219_vm2, %v342_v58, %v343_v54 }
  0xc7   : > { %v222_v61 = vsel %vm221_vm7, %v214_v55, %v220_v59  ;;  %v346_v62 = vsel %vm345_vm8, %v339_v56, %v344_v60  ;;  %v599_v31 = vld [vmem:[#allocation2 + $0x18] sm:$0xf]  ;;  %v617_v32 = vld [vmem:[#allocation2 + $0x1c] sm:$0xf] }
  0xc8   : > { %225 = vst [vmem:[#allocation2] sm:$0xcc] %v222_v61 }
  0xc9   : > { %349 = vst [vmem:[#allocation2 + $0x24] sm:$0xcc] %v346_v62 }
  0xcb   : > { %v361_v63 = vpop.permute.xlu0 %360 }
  0xcc   : > { %370 = vst.msk [vmem:[#allocation2 + $0x38] sm:$0x3] %vm203_vm0, %v361_v63  ;;  %v363_v2 = vrot.slane %v361_v63, 4 }
  0xcf   : > { %v587_v37 = vld [vmem:[#allocation2] sm:$0xf]  ;;  %v614_v39 = vld [vmem:[#allocation2 + $0x4] sm:$0xf] }
  0xd0   : > { %v618_v24 = vld [vmem:[#allocation2 + $0x20] sm:$0xf0]  ;;  %v601_v29 = vld [vmem:[#allocation2 + $0x24] sm:$0xf0] }
  0xd1   : > { %v600_v34 = vor.u32 %v618_v24, %v599_v31  ;;  %v604_v35 = vor.u32 %v617_v32, %v601_v29 }
  0xd3   : > { %v359_v0 = vpop.permute.xlu0 %358  ;;  %v381_v1 = vld [vmem:[#allocation2 + $0x38] sm:$0x3] }
  0xd4   : > { %v362_v3 = vrot.slane %v359_v0, 4  ;;  %v412_v4 = vunpack.c.l.b16 %v381_v1 }
  0xd6   : > { %v364_v6 = vsel %vm219_vm2, %v362_v3, %v363_v2  ;;  %v421_v7 = vpack.c.b16 %v412_v4, %v412_v4  ;;  %v386_v43 = vpop.permute.xlu1 %385 }
  0xd7   : > { %v366_v9 = vsel %vm365_vm9, %v359_v0, %v364_v6 }
  0xd8   : > { %369 = vst [vmem:[#allocation2 + $0x30] sm:$0x33] %v366_v9  ;;  %v440_v11 = vsel %vm432_vm10, %v421_v7, 0 }
  0xd9   : > { %473 = vmatpush.bf16.msra.mxu2 %v440_v11 }
  0xdb   : > { %v259_v13 = vpop.permute.xlu0 %258 }
  0xdc   : > { %268 = vst.msk [vmem:[#allocation2 + $0x14] sm:$0xc] %vm226_vm1, %v259_v13  ;;  %v261_v21 = vrot.slane %v259_v13, 4 }
  0xdd   : > { %474 = vmatpush.bf16.msra.mxu2 %v608_v14 }
  0xdf   : > { %v380_v15 = vld [vmem:[#allocation2 + $0x30] sm:$0x33] }
  0xe0   : > { %v410_v16 = vunpack.c.l.b16 %v380_v15  ;;  %v411_v17 = vunpack.c.h.b16 %v380_v15 }
  0xe2   : > { %v419_v18 = vpack.c.b16 %v410_v16, %v410_v16  ;;  %v420_v19 = vpack.c.b16 %v411_v17, %v411_v17 }
  0xe3   : > { %v257_v22 = vpop.permute.xlu0 %256  ;;  %v616_v23 = vld [vmem:[#allocation2 + $0x10] sm:$0xf0] }
  0xe4   : > { %v260_v25 = vrot.slane %v257_v22, 4  ;;  %v434_v26 = vsel %vm432_vm10, %v419_v18, 0  ;;  %v437_v27 = vsel %vm432_vm10, %v420_v19, 0  ;;  %v596_v28 = vor.u32 %v616_v23, %v595_v20 }
  0xe5   : > { %447 = vmatpush.bf16.msra.mxu0 %v434_v26  ;;  %460 = vmatpush.bf16.msra.mxu1 %v437_v27 }
  0xe6   : > { %v262_v30 = vsel %vm219_vm2, %v260_v25, %v261_v21  ;;  %475 = vmatpush.bf16.msra.mxu2 %v596_v28 }
  0xe7   : > { %v264_v33 = vsel %vm263_vm11, %v257_v22, %v262_v30 }
  0xe8   : > { %267 = vst [vmem:[#allocation2 + $0xc] sm:$0xcc] %v264_v33 }
  0xe9   : > { %448 = vmatpush.bf16.msra.mxu0 %v600_v34  ;;  %461 = vmatpush.bf16.msra.mxu1 %v604_v35 }
  0xea   : > { %611 = vmatmul.msk.bf16.vlgmr.msra.gmra.mxu2 %vm428_vm12, %v371_v36 }
  0xef   : > { %v615_v38 = vld [vmem:[#allocation2 + $0x8] sm:$0xf0]  ;;  %v589_v40 = vld [vmem:[#allocation2 + $0xc] sm:$0xf0] }
  0xf0   : > { %v588_v41 = vor.u32 %v615_v38, %v587_v37  ;;  %v592_v42 = vor.u32 %v614_v39, %v589_v40 }
  0xf2   : > { %449 = vmatpush.bf16.msra.mxu0 %v588_v41  ;;  %462 = vmatpush.bf16.msra.mxu1 %v592_v42 }
  0xf5   : > { %609 = vmatmul.msk.bf16.vlgmr.msra.gmra.mxu0 %vm428_vm12, %v371_v36  ;;  %610 = vmatmul.msk.bf16.vlgmr.msra.gmra.mxu1 %vm428_vm12, %v371_v36 }
 0x16d   : > { %v477_v44 = vpop.f32.mrf.mxu2 }
 0x16e   : > { %v478_v45 = vadd.f32 %v477_v44, %v386_v43 }
 0x170   : > { %v483_v46 = vmax.f32 %v478_v45, 0.0  ;;  %v490_v47 = vsub.f32 0.0, %v478_v45 }
 0x172   : > { %487 = vst.msk [vmem:[%s192_s8 + $0x10] sm:$0xff] %vm486_vm13, %v483_v46  ;;  %v493_v48 = vmax.f32 %v490_v47, 0.0  ;;  %v451_v49 = vpop.f32.mrf.mxu0  ;;  %v464_v50 = vpop.f32.mrf.mxu1 }
 0x173   : > { %v452_v51 = vadd.f32 %v451_v49, %v386_v43  ;;  %v465_v52 = vadd.f32 %v464_v50, %v386_v43 }
 0x174   : > { %496 = vst.msk [vmem:[%s192_s8 + $0x28] sm:$0xff] %vm486_vm13, %v493_v48 }
 0x175   : > { %v481_v53 = vmax.f32 %v452_v51, 0.0  ;;  %v488_v54 = vsub.f32 0.0, %v452_v51  ;;  %v482_v55 = vmax.f32 %v465_v52, 0.0  ;;  %v489_v56 = vsub.f32 0.0, %v465_v52  ;;  %v479_v57 = vpop.f32.mrf.mxu2 }
 0x177   : > { %484 = vst [vmem:[%s192_s8] sm:$0xff] %v481_v53  ;;  %v491_v58 = vmax.f32 %v488_v54, 0.0  ;;  %v492_v59 = vmax.f32 %v489_v56, 0.0 }
 0x178   : > { %485 = vst [vmem:[%s192_s8 + $0x8] sm:$0xff] %v482_v55 }
 0x179   : > { %494 = vst [vmem:[%s192_s8 + $0x18] sm:$0xff] %v491_v58 }
 0x17a   : > { %495 = vst [vmem:[%s192_s8 + $0x20] sm:$0xff] %v492_v59  ;;  %v453_v60 = vpop.f32.mrf.mxu0  ;;  %v466_v61 = vpop.f32.mrf.mxu1 }
 0x17b PF: > { %s13_s14 = sadd.s32 1, %s679_s14   ;;  %s792_s12 = smov %s675_s13 }
 0x17c   : > { %p10_p5 = scmp.ge.s32.totalorder %s13_s14, 4   ;;  %s793_s13 = smov %s795_s15 }
 0x17e   :  { %12 = sbr.rel (!%p10_p5) target bundleno = 2 (0x2), region = 66 }

</bundles_post_ra>
